<compile_context>
chip_gen: v6e
topology: v6e:2x2x1
jax: 0.10.0
libtpu: 0.0.40
codegen_flags: <defaults>
</compile_context>

<pallas_src>
import functools

import jax
import jax.numpy as jnp
from jax.experimental import pallas as pl
from jax.experimental.pallas import tpu as pltpu


def _round_up(x, m):
    return ((x + m - 1) // m) * m


def _mlp_core(x, w1_ref, b1_ref, w2_ref, b2_ref, compute_dtype):
    """Linear(F,64)+ReLU -> Linear(64,128)+ReLU, f32 accumulation."""
    h1 = jnp.dot(x, w1_ref[...], preferred_element_type=jnp.float32) + b1_ref[...]
    h1 = jnp.maximum(h1, 0.0)
    if compute_dtype != jnp.float32:
        h1 = h1.astype(compute_dtype)
        w2 = w2_ref[...].astype(compute_dtype)
    else:
        w2 = w2_ref[...]
    h2 = jnp.dot(h1, w2, preferred_element_type=jnp.float32) + b2_ref[...]
    return jnp.maximum(h2, 0.0)


def mlp_sigmoid2_kernel(x_ref, w1_ref, b1_ref, w2_ref, b2_ref, w3d_ref, b3d_ref,
                        o_ref, *, compute_dtype):
    """2-action fast path: softmax over 2 classes == sigmoid of the logit difference."""
    h2 = _mlp_core(x_ref[...], w1_ref, b1_ref, w2_ref, b2_ref, compute_dtype)

    if compute_dtype != jnp.float32:
        h2c = h2.astype(compute_dtype)
        w3d = w3d_ref[...].astype(compute_dtype)
    else:
        h2c, w3d = h2, w3d_ref[...]

    # d = logit0 - logit1, shape (tm, 1)
    d = jnp.dot(h2c, w3d, preferred_element_type=jnp.float32) + b3d_ref[...]

    # Numerically stable sigmoid(d) using exp(-|d|) (EUP) + approx reciprocal (EUP slot)
    # refined with one Newton-Raphson step -> full f32 accuracy.
    e = jnp.exp(-jnp.abs(d))                      # in (0, 1]
    denom = 1.0 + e                               # in (1, 2]
    inv = pl.reciprocal(denom, approx=True)
    inv = inv * (2.0 - denom * inv)               # NR refinement
    p0 = jnp.where(d >= 0, inv, e * inv)          # sigmoid(d)
    p1 = 1.0 - p0

    col = jax.lax.broadcasted_iota(jnp.int32, o_ref.shape, 1)
    o_ref[...] = jnp.where(col == 0, p0, p1)      # (tm, 2) narrow store


def mlp_softmax_kernel(x_ref, w1_ref, b1_ref, w2_ref, b2_ref, w3_ref, b3_ref,
                       o_ref, *, compute_dtype):
    """Generic path for output_size != 2: narrow (tm, A) logits + row softmax."""
    h2 = _mlp_core(x_ref[...], w1_ref, b1_ref, w2_ref, b2_ref, compute_dtype)

    if compute_dtype != jnp.float32:
        h2c = h2.astype(compute_dtype)
        w3 = w3_ref[...].astype(compute_dtype)
    else:
        h2c, w3 = h2, w3_ref[...]

    logits = jnp.dot(h2c, w3, preferred_element_type=jnp.float32) + b3_ref[...]
    m = jnp.max(logits, axis=-1, keepdims=True)
    e = jnp.exp(logits - m)
    denom = jnp.sum(e, axis=-1, keepdims=True)
    inv = pl.reciprocal(denom, approx=True)
    inv = inv * (2.0 - denom * inv)               # NR refinement
    o_ref[...] = e * inv


def pack_params(p):
    """Repack PyTorch-style (pre-transposed, (in,out)) params for the kernel."""
    f, h1 = p["w1"].shape
    h2, out_size = p["w3"].shape

    packed = {
        "w1": p["w1"].astype(jnp.float32),             # (F, 64)
        "b1": p["b1"].astype(jnp.float32),             # (1, 64)
        "w2": p["w2"].astype(jnp.float32),             # (64, 128)
        "b2": p["b2"].astype(jnp.float32),             # (1, 128)
        "w3": p["w3"].astype(jnp.float32),             # (128, A)
        "b3": p["b3"].astype(jnp.float32),             # (1, A)
        "in_features": f,
        "hidden1": h1,
        "hidden2": h2,
        "out_size": out_size,
    }
    if out_size == 2:
        # softmax over 2 classes = sigmoid(logit0 - logit1)
        w3d = (p["w3"][:, 0] - p["w3"][:, 1]).astype(jnp.float32).reshape(h2, 1)
        b3d = (p["b3"][0, 0] - p["b3"][0, 1]).astype(jnp.float32).reshape(1, 1)
        packed["w3_diff"] = w3d                        # (128, 1)
        packed["b3_diff"] = b3d                        # (1, 1)
    return packed


def sequential_network_forward(x, packed, *, tm_max=2048, vmem_limit_bytes=None,
                               use_bf16=False):
    """x: (N, F) float. packed: output of pack_params. Returns (N, A) softmax probs."""
    n, f = x.shape
    assert f == packed["in_features"]
    out_size = packed["out_size"]
    x = x.astype(jnp.float32)

    # --- batch tiling ---------------------------------------------------------------
    n8 = _round_up(max(n, 1), 8)
    if n8 <= tm_max:
        tm, num_tiles = n8, 1
    else:
        # Even tile count so the "parallel" batch axis splits evenly over v7x's 2 TCs.
        num_tiles = 2 * ((n8 + 2 * tm_max - 1) // (2 * tm_max))
        tm = _round_up((n8 + num_tiles - 1) // num_tiles, 8)
    n_pad = tm * num_tiles
    if n_pad != n:
        x = jnp.pad(x, ((0, n_pad - n), (0, 0)))       # row padding only (features untouched)

    compute_dtype = jnp.bfloat16 if use_bf16 else jnp.float32
    const = lambda i: (0, 0)                           # weights stay VMEM-resident

    in_specs = [
        pl.BlockSpec((tm, f), lambda i: (i, 0)),       # x: last dim == full dim -> legal
        pl.BlockSpec(packed["w1"].shape, const),
        pl.BlockSpec(packed["b1"].shape, const),
        pl.BlockSpec(packed["w2"].shape, const),
        pl.BlockSpec(packed["b2"].shape, const),
    ]
    if out_size == 2:
        kernel = functools.partial(mlp_sigmoid2_kernel, compute_dtype=compute_dtype)
        in_specs += [pl.BlockSpec(packed["w3_diff"].shape, const),
                     pl.BlockSpec(packed["b3_diff"].shape, const)]
        extra = (packed["w3_diff"], packed["b3_diff"])
    else:
        kernel = functools.partial(mlp_softmax_kernel, compute_dtype=compute_dtype)
        in_specs += [pl.BlockSpec(packed["w3"].shape, const),
                     pl.BlockSpec(packed["b3"].shape, const)]
        extra = (packed["w3"], packed["b3"])

    h1, h2 = packed["hidden1"], packed["hidden2"]
    param_bytes = 4 * (f * h1 + h1 + h1 * h2 + h2 + h2 * out_size + out_size)
    cost = pl.CostEstimate(
        flops=2 * n_pad * (f * h1 + h1 * h2 + h2 * out_size),
        transcendentals=n_pad * out_size,
        bytes_accessed=4 * n_pad * (f + out_size) + param_bytes,
    )

    cp_kwargs = dict(dimension_semantics=("parallel",))
    if vmem_limit_bytes is not None:
        cp_kwargs["vmem_limit_bytes"] = vmem_limit_bytes

    out = pl.pallas_call(
        kernel,
        out_shape=jax.ShapeDtypeStruct((n_pad, out_size), jnp.float32),
        grid=(num_tiles,),
        in_specs=in_specs,
        out_specs=pl.BlockSpec((tm, out_size), lambda i: (i, 0)),
        compiler_params=pltpu.CompilerParams(**cp_kwargs),
        cost_estimate=cost,
    )(x, packed["w1"], packed["b1"], packed["w2"], packed["b2"], *extra)

    return out[:n] if n_pad != n else out


def init_params(key, in_features, hidden1, hidden2, out_size):
    """Deterministic synthetic init (PyTorch-Linear-style uniform fan-in bound).
    Weights stored already transposed: (in, out)."""
    ks = jax.random.split(key, 6)

    def lin(kw, kb, fan_in, fan_out):
        bound = 1.0 / jnp.sqrt(jnp.float32(fan_in))
        w = jax.random.uniform(kw, (fan_in, fan_out), jnp.float32, -bound, bound)
        b = jax.random.uniform(kb, (1, fan_out), jnp.float32, -bound, bound)
        return w, b

    w1, b1 = lin(ks[0], ks[1], in_features, hidden1)
    w2, b2 = lin(ks[2], ks[3], hidden1, hidden2)
    w3, b3 = lin(ks[4], ks[5], hidden2, out_size)
    return {"w1": w1, "b1": b1, "w2": w2, "b2": b2, "w3": w3, "b3": b3}


def reference_forward(x, p):
    h1 = jnp.maximum(x @ p["w1"] + p["b1"], 0.0)
    h2 = jnp.maximum(h1 @ p["w2"] + p["b2"], 0.0)
    logits = h2 @ p["w3"] + p["b3"]
    return jax.nn.softmax(logits, axis=1)


if __name__ == "__main__":
    key = jax.random.PRNGKey(0)
    k_x, k_x2, k_p, k_p6 = jax.random.split(key, 4)

    in_features = 4    # CartPole state dim  (input_shape[0])
    hidden1, hidden2 = 64, 128
    out_size = 2       # number of actions   (output_size)

    params = init_params(k_p, in_features, hidden1, hidden2, out_size)
    packed = pack_params(params)

    # Small control-loop-sized batch (single tile, sigmoid fast path).
    x_small = jax.random.normal(k_x, (8, in_features), jnp.float32)
    out_small = jax.block_until_ready(sequential_network_forward(x_small, packed))
    ref_small = reference_forward(x_small, params)
    assert out_small.shape == (8, out_size)
    assert jnp.allclose(out_small, ref_small, atol=1e-5, rtol=1e-5), "small-batch mismatch"
    assert jnp.allclose(jnp.sum(out_small, axis=1), 1.0, atol=1e-5), "rows must sum to 1"

    # Larger ragged batch: exercises the even-count batch grid + row-padding path.
    x_big = jax.random.normal(k_x2, (2500, in_features), jnp.float32)
    out_big = jax.block_until_ready(sequential_network_forward(x_big, packed))
    ref_big = reference_forward(x_big, params)
    assert out_big.shape == (2500, out_size)
    assert jnp.allclose(out_big, ref_big, atol=1e-5, rtol=1e-5), "large-batch mismatch"
    assert jnp.allclose(jnp.sum(out_big, axis=1), 1.0, atol=1e-5), "rows must sum to 1"

    # Generic output_size path (narrow softmax kernel), e.g. a 6-action variant.
    params6 = init_params(k_p6, in_features, hidden1, hidden2, 6)
    packed6 = pack_params(params6)
    out6 = jax.block_until_ready(sequential_network_forward(x_small, packed6))
    ref6 = reference_forward(x_small, params6)
    assert out6.shape == (8, 6)
    assert jnp.allclose(out6, ref6, atol=1e-5, rtol=1e-5), "generic-path mismatch"
    assert jnp.allclose(jnp.sum(out6, axis=1), 1.0, atol=1e-5), "rows must sum to 1"

    print("KERNEL_OK")
</pallas_src>

<mosaic_0001>
module attributes {stable_mosaic.version = 11 : i64} {
  func.func @mlp_sigmoid2_kernel(%arg0: i32, %arg1: memref<8x4xf32, #tpu.memory_space<vmem>>, %arg2: memref<4x64xf32, #tpu.memory_space<vmem>>, %arg3: memref<1x64xf32, #tpu.memory_space<vmem>>, %arg4: memref<64x128xf32, #tpu.memory_space<vmem>>, %arg5: memref<1x128xf32, #tpu.memory_space<vmem>>, %arg6: memref<128x1xf32, #tpu.memory_space<vmem>>, %arg7: memref<1x1xf32, #tpu.memory_space<vmem>>, %arg8: memref<8x2xf32, #tpu.memory_space<vmem>>) attributes {dimension_semantics = [#tpu.dimension_semantics<parallel>], iteration_bounds = array<i64: 1>, scalar_prefetch = 0 : i64, scratch_operands = 0 : i64, tpu.core_type = #tpu.core_type<tc>, window_params = [{transform_indices = @transform_0, window_bounds = array<i64: 8, 4>}, {pipeline_mode = #tpu.pipeline_mode<synchronous>, transform_indices = @transform_1, window_bounds = array<i64: 4, 64>}, {pipeline_mode = #tpu.pipeline_mode<synchronous>, transform_indices = @transform_2, window_bounds = array<i64: 1, 64>}, {pipeline_mode = #tpu.pipeline_mode<synchronous>, transform_indices = @transform_3, window_bounds = array<i64: 64, 128>}, {pipeline_mode = #tpu.pipeline_mode<synchronous>, transform_indices = @transform_4, window_bounds = array<i64: 1, 128>}, {pipeline_mode = #tpu.pipeline_mode<synchronous>, transform_indices = @transform_5, window_bounds = array<i64: 128, 1>}, {pipeline_mode = #tpu.pipeline_mode<synchronous>, transform_indices = @transform_6, window_bounds = array<i64: 1, 1>}, {transform_indices = @transform_7, window_bounds = array<i64: 8, 2>}]} {
    %c0 = arith.constant 0 : index
    %c0_0 = arith.constant 0 : index
    %0 = vector.load %arg1[%c0, %c0_0] : memref<8x4xf32, #tpu.memory_space<vmem>>, vector<8x4xf32>
    %c0_1 = arith.constant 0 : index
    %c0_2 = arith.constant 0 : index
    %1 = vector.load %arg2[%c0_1, %c0_2] : memref<4x64xf32, #tpu.memory_space<vmem>>, vector<4x64xf32>
    %cst = arith.constant dense<0.000000e+00> : vector<8x64xf32>
    %2 = tpu.matmul %0, %1, %cst {dimension_numbers = #tpu.dot_dimension_numbers<[1], [0], [0], [1], [0, 0, 1, 1], [], []>} : vector<8x4xf32>, vector<4x64xf32>, vector<8x64xf32> -> vector<8x64xf32>
    %c0_3 = arith.constant 0 : index
    %c0_4 = arith.constant 0 : index
    %3 = vector.load %arg3[%c0_3, %c0_4] : memref<1x64xf32, #tpu.memory_space<vmem>>, vector<1x64xf32>
    %4 = vector.broadcast %3 : vector<1x64xf32> to vector<8x64xf32>
    %5 = arith.addf %2, %4 : vector<8x64xf32>
    %cst_5 = arith.constant 0.000000e+00 : f32
    %6 = vector.broadcast %cst_5 : f32 to vector<8x64xf32>
    %7 = arith.maximumf %5, %6 : vector<8x64xf32>
    %c0_6 = arith.constant 0 : index
    %c0_7 = arith.constant 0 : index
    %8 = vector.load %arg4[%c0_6, %c0_7] : memref<64x128xf32, #tpu.memory_space<vmem>>, vector<64x128xf32>
    %cst_8 = arith.constant dense<0.000000e+00> : vector<8x128xf32>
    %9 = tpu.matmul %7, %8, %cst_8 {dimension_numbers = #tpu.dot_dimension_numbers<[1], [0], [0], [1], [0, 0, 1, 1], [], []>} : vector<8x64xf32>, vector<64x128xf32>, vector<8x128xf32> -> vector<8x128xf32>
    %c0_9 = arith.constant 0 : index
    %c0_10 = arith.constant 0 : index
    %10 = vector.load %arg5[%c0_9, %c0_10] : memref<1x128xf32, #tpu.memory_space<vmem>>, vector<1x128xf32>
    %11 = vector.broadcast %10 : vector<1x128xf32> to vector<8x128xf32>
    %12 = arith.addf %9, %11 : vector<8x128xf32>
    %cst_11 = arith.constant 0.000000e+00 : f32
    %13 = vector.broadcast %cst_11 : f32 to vector<8x128xf32>
    %14 = arith.maximumf %12, %13 : vector<8x128xf32>
    %c0_12 = arith.constant 0 : index
    %c0_13 = arith.constant 0 : index
    %15 = vector.load %arg6[%c0_12, %c0_13] : memref<128x1xf32, #tpu.memory_space<vmem>>, vector<128x1xf32>
    %cst_14 = arith.constant dense<0.000000e+00> : vector<8x1xf32>
    %16 = tpu.matmul %14, %15, %cst_14 {dimension_numbers = #tpu.dot_dimension_numbers<[1], [0], [0], [1], [0, 0, 1, 1], [], []>} : vector<8x128xf32>, vector<128x1xf32>, vector<8x1xf32> -> vector<8x1xf32>
    %c0_15 = arith.constant 0 : index
    %c0_16 = arith.constant 0 : index
    %17 = vector.load %arg7[%c0_15, %c0_16] : memref<1x1xf32, #tpu.memory_space<vmem>>, vector<1x1xf32>
    %18 = vector.broadcast %17 : vector<1x1xf32> to vector<8x1xf32>
    %19 = arith.addf %16, %18 : vector<8x1xf32>
    %20 = math.absf %19 : vector<8x1xf32>
    %cst_17 = arith.constant 0.000000e+00 : f32
    %21 = vector.broadcast %cst_17 : f32 to vector<8x1xf32>
    %22 = arith.subf %21, %20 : vector<8x1xf32>
    %23 = math.exp %22 : vector<8x1xf32>
    %cst_18 = arith.constant 1.000000e+00 : f32
    %24 = vector.broadcast %cst_18 : f32 to vector<8x1xf32>
    %25 = arith.addf %24, %23 : vector<8x1xf32>
    %26 = tpu.reciprocal %25 {approx = true} : vector<8x1xf32> -> vector<8x1xf32>
    %27 = arith.mulf %25, %26 : vector<8x1xf32>
    %cst_19 = arith.constant 2.000000e+00 : f32
    %28 = vector.broadcast %cst_19 : f32 to vector<8x1xf32>
    %29 = arith.subf %28, %27 : vector<8x1xf32>
    %30 = arith.mulf %26, %29 : vector<8x1xf32>
    %cst_20 = arith.constant 0.000000e+00 : f32
    %31 = vector.broadcast %cst_20 : f32 to vector<8x1xf32>
    %32 = arith.cmpf oge, %19, %31 : vector<8x1xf32>
    %33 = arith.mulf %23, %30 : vector<8x1xf32>
    %34 = arith.select %32, %30, %33 : vector<8x1xi1>, vector<8x1xf32>
    %cst_21 = arith.constant 1.000000e+00 : f32
    %35 = vector.broadcast %cst_21 : f32 to vector<8x1xf32>
    %36 = arith.subf %35, %34 : vector<8x1xf32>
    %37 = tpu.iota {dimensions = array<i32: 1>} : vector<8x2xi32>
    %c0_i32 = arith.constant 0 : i32
    %38 = vector.broadcast %c0_i32 : i32 to vector<8x2xi32>
    %39 = arith.cmpi eq, %37, %38 : vector<8x2xi32>
    %40 = vector.shape_cast %34 : vector<8x1xf32> to vector<8x1xf32>
    %41 = vector.broadcast %40 : vector<8x1xf32> to vector<8x2xf32>
    %42 = vector.shape_cast %36 : vector<8x1xf32> to vector<8x1xf32>
    %43 = vector.broadcast %42 : vector<8x1xf32> to vector<8x2xf32>
    %44 = arith.select %39, %41, %43 : vector<8x2xi1>, vector<8x2xf32>
    %c0_22 = arith.constant 0 : index
    %c0_23 = arith.constant 0 : index
    %45 = vector.load %arg8[%c0_22, %c0_23] : memref<8x2xf32, #tpu.memory_space<vmem>>, vector<8x2xf32>
    tpu.vector_store %arg8[%c0_22, %c0_23], %44 {strides = array<i32>} : memref<8x2xf32, #tpu.memory_space<vmem>>, vector<8x2xf32>,
    return
  }
  func.func @transform_0(%arg0: i32) -> (i32, i32) {
    %c0_i32 = arith.constant 0 : i32
    %c0_i32_0 = arith.constant 0 : i32
    return %arg0, %c0_i32 : i32, i32
  }
  func.func @transform_1(%arg0: i32) -> (i32, i32) {
    %c0_i32 = arith.constant 0 : i32
    %c0_i32_0 = arith.constant 0 : i32
    %c0_i32_1 = arith.constant 0 : i32
    return %c0_i32, %c0_i32_0 : i32, i32
  }
  func.func @transform_2(%arg0: i32) -> (i32, i32) {
    %c0_i32 = arith.constant 0 : i32
    %c0_i32_0 = arith.constant 0 : i32
    %c0_i32_1 = arith.constant 0 : i32
    return %c0_i32, %c0_i32_0 : i32, i32
  }
  func.func @transform_3(%arg0: i32) -> (i32, i32) {
    %c0_i32 = arith.constant 0 : i32
    %c0_i32_0 = arith.constant 0 : i32
    %c0_i32_1 = arith.constant 0 : i32
    return %c0_i32, %c0_i32_0 : i32, i32
  }
  func.func @transform_4(%arg0: i32) -> (i32, i32) {
    %c0_i32 = arith.constant 0 : i32
    %c0_i32_0 = arith.constant 0 : i32
    %c0_i32_1 = arith.constant 0 : i32
    return %c0_i32, %c0_i32_0 : i32, i32
  }
  func.func @transform_5(%arg0: i32) -> (i32, i32) {
    %c0_i32 = arith.constant 0 : i32
    %c0_i32_0 = arith.constant 0 : i32
    %c0_i32_1 = arith.constant 0 : i32
    return %c0_i32, %c0_i32_0 : i32, i32
  }
  func.func @transform_6(%arg0: i32) -> (i32, i32) {
    %c0_i32 = arith.constant 0 : i32
    %c0_i32_0 = arith.constant 0 : i32
    %c0_i32_1 = arith.constant 0 : i32
    return %c0_i32, %c0_i32_0 : i32, i32
  }
  func.func @transform_7(%arg0: i32) -> (i32, i32) {
    %c0_i32 = arith.constant 0 : i32
    %c0_i32_0 = arith.constant 0 : i32
    return %arg0, %c0_i32 : i32, i32
  }
}

</mosaic_0001>

<bundles_post_ra>
// kernel: tpu_custom_call.1
= control target key start
LH: loop header
LB: loop body
LE: loop exit
PB: predicated region body
PF: predicated region fallthrough
CT: control target
= control target key end

     0   :  { %vm41_vm0 = vcmask 1043456   ;;  %vm37_vm1 = vcmask 31744   ;;  %v433_v0 = vmov 0.0   ;;  %vm434_vm2 = vmmov 0   ;;  %s594_s1 = inlined_call_operand.vmem [shape: f32[4,64], index: 1, kind: input, shape index: {}]   ;;  %s595_s0 = inlined_call_operand.vmem [shape: f32[8,4], index: 0, kind: input, shape index: {}]   ;;  %s596_s3 = inlined_call_operand.vmem [shape: f32[64,128], index: 3, kind: input, shape index: {}]   ;;  %s597_s5 = inlined_call_operand.vmem [shape: f32[128,1], index: 5, kind: input, shape index: {}]   ;;  %s598_s2 = inlined_call_operand.vmem [shape: f32[1,64], index: 2, kind: input, shape index: {}]   ;;  %s599_s6 = inlined_call_operand.<no memory space> [shape: f32[1,1], index: 6, kind: input, shape index: {}]   ;;  %s600_s4 = inlined_call_operand.vmem [shape: f32[1,128], index: 4, kind: input, shape index: {}]   ;;  %s601_s7 = inlined_call_operand.vmem [shape: f32[8,2], index: 7, kind: output, shape index: {}]  }
   0x1   :  { %366 = vmatprep.subr.mxu1 %v433_v0  ;;  %v29_v1 = vld [vmem:[%s594_s1] sm:$0xf]  ;;  %368 = vmatprep.mubr.msk.f32.mxu1 %vm434_vm2, %v433_v0  ;;  %v123_v3 = vld [vmem:[%s596_s3 + $0x38] sm:$0xff]  ;;  %v122_v4 = vld [vmem:[%s596_s3 + $0x30] sm:$0xff]  ;;  %vm131_vm3 = vcmask 523264   ;;  %v12_v32 = vstv %s599_s6  ;;  %v435_v38 = vmov 0   ;;  %v312_v55 = vlaneseq }
   0x2   :  { %v28_v2 = vld [vmem:[%s595_s0] sm:$0xff]  ;;  %367 = vmatpush3.msk.msra.mxu1 %vm41_vm0, %v29_v1  ;;  %390 = vmatprep.subr.mxu0 %v433_v0  ;;  %v121_v5 = vld [vmem:[%s596_s3 + $0x28] sm:$0xff]  ;;  %v119_v7 = vld [vmem:[%s596_s3 + $0x18] sm:$0xff]  ;;  %13 = vst [vmem:[#allocation2] sm:$0x1] %v12_v32  ;;  %vm326_vm6 = vcmask 15360  }
   0x3   :  { %369 = vmatmul.mubr.msk.f32.vlgmr.msra.gmra.mxu1 %vm37_vm1, %v28_v2  ;;  %371 = vmatprep.subr.mxu1 %v433_v0  ;;  %v120_v6 = vld [vmem:[%s596_s3 + $0x20] sm:$0xff]  ;;  %v118_v8 = vld [vmem:[%s596_s3 + $0x10] sm:$0xff]  ;;  %v117_v9 = vld [vmem:[%s596_s3 + $0x8] sm:$0xff]  ;;  %v313_v56 = vand.u32 127, %v312_v55 }
   0x4   :  { %372 = vmatpush3.msra.mxu1 %v123_v3  ;;  %387 = vmatprep.mubr.msk.f32.mxu1 %vm434_vm2, %v433_v0  ;;  %v116_v10 = vld [vmem:[%s596_s3] sm:$0xff]  ;;  %v221_v11 = vld [vmem:[%s597_s5 + $0x78] sm:$0xff]  ;;  %v220_v12 = vld [vmem:[%s597_s5 + $0x70] sm:$0xff] }
   0x5   :  { %373 = vmatprep.subr.mxu1 %v433_v0  ;;  %422 = vmatprep.mubr.msk.f32.mxu0 %vm434_vm2, %v433_v0  ;;  %v219_v13 = vld [vmem:[%s597_s5 + $0x68] sm:$0xff]  ;;  %v218_v14 = vld [vmem:[%s597_s5 + $0x60] sm:$0xff]  ;;  %v217_v15 = vld [vmem:[%s597_s5 + $0x58] sm:$0xff]  ;;  %vm314_vm5 = vcmp.eq.s32.totalorder %v313_v56, 0 }
   0x6   :  { %374 = vmatpush3.msra.mxu1 %v122_v4  ;;  %391 = vmatpush3.msra.mxu0 %v221_v11  ;;  %v216_v16 = vld [vmem:[%s597_s5 + $0x50] sm:$0xff]  ;;  %v215_v17 = vld [vmem:[%s597_s5 + $0x48] sm:$0xff]  ;;  %v214_v18 = vld [vmem:[%s597_s5 + $0x40] sm:$0xff] }
   0x7   :  { %375 = vmatprep.subr.mxu1 %v433_v0  ;;  %392 = vmatprep.subr.mxu0 %v433_v0  ;;  %v213_v19 = vld [vmem:[%s597_s5 + $0x38] sm:$0xff]  ;;  %v212_v20 = vld [vmem:[%s597_s5 + $0x30] sm:$0xff]  ;;  %v211_v21 = vld [vmem:[%s597_s5 + $0x28] sm:$0xff] }
   0x8   :  { %376 = vmatpush3.msra.mxu1 %v121_v5  ;;  %393 = vmatpush3.msra.mxu0 %v220_v12  ;;  %v210_v22 = vld [vmem:[%s597_s5 + $0x20] sm:$0xff]  ;;  %v209_v23 = vld [vmem:[%s597_s5 + $0x18] sm:$0xff]  ;;  %v208_v29 = vld [vmem:[%s597_s5 + $0x10] sm:$0xff] }
   0x9   :  { %377 = vmatprep.subr.mxu1 %v433_v0  ;;  %394 = vmatprep.subr.mxu0 %v433_v0  ;;  %v332_v24 = vld [vmem:[%s598_s2] ss:$0 sm:$0xff]  ;;  %v207_v30 = vld [vmem:[%s597_s5 + $0x8] sm:$0xff] }
   0xa   :  { %378 = vmatpush3.msra.mxu1 %v120_v6  ;;  %395 = vmatpush3.msra.mxu0 %v219_v13  ;;  %v206_v31 = vld [vmem:[%s597_s5] sm:$0xff] }
   0xb   :  { %379 = vmatprep.subr.mxu1 %v433_v0  ;;  %396 = vmatprep.subr.mxu0 %v433_v0  ;;  %v335_v33 = vld [vmem:[%s600_s4] ss:$0 sm:$0xff] }
   0xc   :  { %380 = vmatpush3.msra.mxu1 %v119_v7  ;;  %397 = vmatpush3.msra.mxu0 %v218_v14  ;;  %v337_v39 = vld [vmem:[#allocation2] ss:$0 sm:$0xff] }
   0xd   :  { %381 = vmatprep.subr.mxu1 %v433_v0  ;;  %398 = vmatprep.subr.mxu0 %v433_v0 }
   0xe   :  { %382 = vmatpush3.msra.mxu1 %v118_v8  ;;  %399 = vmatpush3.msra.mxu0 %v217_v15 }
   0xf   :  { %383 = vmatprep.subr.mxu1 %v433_v0  ;;  %400 = vmatprep.subr.mxu0 %v433_v0 }
  0x10   :  { %384 = vmatpush3.msra.mxu1 %v117_v9  ;;  %401 = vmatpush3.msra.mxu0 %v216_v16 }
  0x11   :  { %385 = vmatprep.subr.mxu1 %v433_v0  ;;  %402 = vmatprep.subr.mxu0 %v433_v0 }
  0x12   :  { %386 = vmatpush3.msra.mxu1 %v116_v10  ;;  %403 = vmatpush3.msra.mxu0 %v215_v17 }
  0x13   :  { %404 = vmatprep.subr.mxu0 %v433_v0  ;;  %428 = vset.pattern.permute.xlu0 %v435_v38 }
  0x14   :  { %405 = vmatpush3.msra.mxu0 %v214_v18 }
  0x15   :  { %406 = vmatprep.subr.mxu0 %v433_v0 }
  0x16   :  { %407 = vmatpush3.msra.mxu0 %v213_v19 }
  0x17   :  { %408 = vmatprep.subr.mxu0 %v433_v0 }
  0x18   :  { %409 = vmatpush3.msra.mxu0 %v212_v20 }
  0x19   :  { %410 = vmatprep.subr.mxu0 %v433_v0 }
  0x1a   :  { %411 = vmatpush3.msra.mxu0 %v211_v21 }
  0x1b   :  { %412 = vmatprep.subr.mxu0 %v433_v0 }
  0x1c   :  { %413 = vmatpush3.msra.mxu0 %v210_v22 }
  0x1d   :  { %414 = vmatprep.subr.mxu0 %v433_v0 }
  0x1e   :  { %415 = vmatpush3.msra.mxu0 %v209_v23 }
  0x1f   :  { %416 = vmatprep.subr.mxu0 %v433_v0 }
  0x20   :  { %417 = vmatpush3.msra.mxu0 %v208_v29 }
  0x21   :  { %418 = vmatprep.subr.mxu0 %v433_v0 }
  0x22   :  { %419 = vmatpush3.msra.mxu0 %v207_v30 }
  0x23   :  { %420 = vmatprep.subr.mxu0 %v433_v0 }
  0x24   :  { %421 = vmatpush3.msra.mxu0 %v206_v31 }
  0xc3   :  { %v111_v25 = vpop.f32.mrf.mxu1 }
  0xc4   :  { %v112_v26 = vadd.f32 %v332_v24, %v111_v25 }
  0xc5   :  { %v370_v27 = vpop.f32.mrf.mxu1 }
  0xc6   :  { %v115_v28 = vmax.f32 %v112_v26, 0.0 }
  0xc8   :  { %388 = vmatmul.mubr.msk.f32.vlgmr.msra.gmra.mxu1 %vm131_vm3, %v115_v28 }
 0x188   :  { %v201_v34 = vpop.f32.mrf.mxu1 }
 0x189   :  { %v202_v35 = vadd.f32 %v335_v33, %v201_v34 }
 0x18a   :  { %v389_v36 = vpop.f32.mrf.mxu1 }
 0x18b   :  { %v205_v37 = vmax.f32 %v202_v35, 0.0 }
 0x18d   :  { %423 = vmatmul.mubr.f32.vlgmr.msra.gmra.mxu0 %v205_v37 }
 0x24d   :  { %v295_v40 = vpop.f32.mrf.mxu0 }
 0x24e   :  { %v296_v41 = vadd.f32 %v337_v39, %v295_v40 }
 0x24f   :  { %v424_v42 = vpop.f32.mrf.mxu0 }
 0x250   :  { %v299_v43 = vand.u32 2147483647, %v296_v41  ;;  %vm308_vm4 = vcmp.ge.f32.partialorder %v296_v41, 0.0 }
 0x252   :  { %v300_v44 = vsub.f32 0.0, %v299_v43 }
 0x254   :  { %v301_v45 = vmul.f32 1.442695, %v300_v44 }
 0x256   :  { %429 = vpow2.f32 %v301_v45 }
 0x263   :  { %v430_v46 = vpop.eup %429 }
 0x264   :  { %v303_v47 = vadd.f32 1.0, %v430_v46 }
 0x266   :  { %431 = vrcp.f32 %v303_v47 }
 0x273   :  { %v432_v48 = vpop.eup %431 }
 0x274   :  { %v305_v49 = vmul.f32 %v432_v48, %v303_v47 }
 0x276   :  { %v306_v50 = vsub.f32 2.0, %v305_v49 }
 0x278   :  { %v307_v51 = vmul.f32 %v432_v48, %v306_v50 }
 0x27a   :  { %v309_v52 = vmul.f32 %v430_v46, %v307_v51 }
 0x27c   :  { %v310_v53 = vsel %vm308_vm4, %v307_v51, %v309_v52 }
 0x27d   :  { %317 = vperm.xlu0 %428, %v310_v53   ;;  %v311_v54 = vsub.f32 1.0, %v310_v53 }
 0x281   :  { %322 = vperm.xlu0 %428, %v311_v54  }
 0x2f8   :  { %v318_v57 = vpop.permute.xlu0 %317 }
 0x2fc   :  { %v323_v58 = vpop.permute.xlu0 %322 }
 0x2fd   :  { %v325_v59 = vsel %vm314_vm5, %v318_v57, %v323_v58 }
 0x2fe   :  { %327 = vst.msk [vmem:[%s601_s7] sm:$0xff] %vm326_vm6, %v325_v59 }

</bundles_post_ra>
